<compile_context>
chip_gen: v6e
topology: v6e:2x2x1
jax: 0.10.0
libtpu: 0.0.40
codegen_flags: <defaults>
</compile_context>

<pallas_src>
import functools

import jax
import jax.numpy as jnp
from jax.experimental import pallas as pl
from jax.experimental.pallas import tpu as pltpu


# -----------------------------------------------------------------------------
# In-kernel math helpers (only called from inside Pallas kernels)
# -----------------------------------------------------------------------------
def _erf_approx(x):
    # Abramowitz & Stegun 7.1.26 (max abs err ~1.5e-7), built from ops that lower
    # cleanly in Mosaic (exp, mul, add, select).
    a1, a2, a3, a4, a5 = 0.254829592, -0.284496736, 1.421413741, -1.453152027, 1.061405429
    p = 0.3275911
    sgn = jnp.where(x >= 0.0, 1.0, -1.0)
    ax = jnp.abs(x)
    t = 1.0 / (1.0 + p * ax)
    poly = ((((a5 * t + a4) * t + a3) * t + a2) * t + a1) * t
    return sgn * (1.0 - poly * jnp.exp(-ax * ax))


def _gelu_exact(x):
    # PyTorch nn.GELU() default ("exact" erf formulation), f32.
    return 0.5 * x * (1.0 + _erf_approx(x * 0.7071067811865476))


def _ln(x, g, b, eps):
    # Single-pass LayerNorm: one reduce pass for sum and sum-of-squares.
    mu = jnp.mean(x, axis=-1, keepdims=True)
    var = jnp.maximum(jnp.mean(x * x, axis=-1, keepdims=True) - mu * mu, 0.0)
    return (x - mu) * jax.lax.rsqrt(var + eps) * g + b


# -----------------------------------------------------------------------------
# Kernel 1: fused patch-embed matmul + CLS token + positional embedding
# -----------------------------------------------------------------------------
def _embed_kernel(p_ref, w_ref, b_ref, cls_ref, pos_ref, o_ref, *, B, Np):
    # One matmul over all B*Np patch rows (fills sublanes), bf16 MXU inputs.
    tok = jnp.dot(p_ref[...].astype(jnp.bfloat16), w_ref[...],
                  preferred_element_type=jnp.float32) + b_ref[...]        # (B*Np, D) f32
    cls_row = cls_ref[0] + pos_ref[0, 0:1, :]                             # (1, D)
    pos_tail = pos_ref[0, 1:, :]                                          # (Np, D)
    for b in range(B):  # B is tiny; unrolled slice writes, no concatenate
        o_ref[b, 0:1, :] = cls_row
        o_ref[b, 1:, :] = tok[b * Np:(b + 1) * Np, :] + pos_tail


def pallas_patch_embed(patches_flat, w, b, cls_tok, pos, B, Np):
    """patches_flat: (B*Np, C*p*p) -> tokens with CLS + pos embed: (B, Np+1, D)."""
    Kp = patches_flat.shape[1]
    Nt, D = pos.shape[1], pos.shape[2]
    return pl.pallas_call(
        functools.partial(_embed_kernel, B=B, Np=Np),
        out_shape=jax.ShapeDtypeStruct((B, Nt, D), jnp.float32),
        grid=(1,),
        in_specs=[
            pl.BlockSpec((B * Np, Kp), lambda i: (0, 0)),
            pl.BlockSpec((Kp, D), lambda i: (0, 0)),
            pl.BlockSpec((1, D), lambda i: (0, 0)),
            pl.BlockSpec((1, 1, D), lambda i: (0, 0, 0)),
            pl.BlockSpec((1, Nt, D), lambda i: (0, 0, 0)),
        ],
        out_specs=pl.BlockSpec((B, Nt, D), lambda i: (0, 0, 0)),
    )(patches_flat, w, b, cls_tok, pos)


# -----------------------------------------------------------------------------
# Kernel 2: ALL transformer blocks + final norm + head, in one pallas_call.
# grid = (B, depth): batch axis "parallel" (megacore), depth axis "arbitrary"
# with the (Nt, D) activations resident in a VMEM scratch across the depth sweep.
# -----------------------------------------------------------------------------
def _blocks_head_kernel(x_ref,
                        ln1g, ln1b, qkvw, qkvb, projw, projb,
                        ln2g, ln2b, fc1w, fc1b, fc2w, fc2b,
                        nrmg, nrmb, hlng, hlnb, hw, hb,
                        logits_ref, act_ref, attn_ref, *, nheads, eps):
    l = pl.program_id(1)

    @pl.when(l == 0)
    def _():
        act_ref[...] = x_ref[0]          # load this batch's tokens into resident VMEM

    x = act_ref[...]                      # (Nt, D) f32
    D = x.shape[-1]
    Dh = D // nheads

    # ---------------- attention branch ----------------
    h = _ln(x, ln1g[0], ln1b[0], eps)
    qkv = jnp.dot(h.astype(jnp.bfloat16), qkvw[0],
                  preferred_element_type=jnp.float32) + qkvb[0]           # (Nt, 3D) f32
    q = qkv[:, :D] * (Dh ** -0.5)         # scale folded into q once (not per score matrix)
    k = qkv[:, D:2 * D]
    v = qkv[:, 2 * D:]

    # TODO(synk): at real ViT sizes (nheads=12, Dh=64) batch the heads into one
    # einsum over an (H, Nt, Dh) layout (bf16 MXU inputs) instead of this unrolled
    # per-head loop whose Dh-wide matmuls pad to full 128-lane MXU issues.
    for hi in range(nheads):
        sl = slice(hi * Dh, (hi + 1) * Dh)
        s = jnp.dot(q[:, sl], k[:, sl].T, preferred_element_type=jnp.float32)
        s = s - jnp.max(s, axis=-1, keepdims=True)
        p = jnp.exp(s)
        p = p * pl.reciprocal(jnp.sum(p, axis=-1, keepdims=True), approx=True)
        # write the head's output straight into its lane slice (no concatenate)
        attn_ref[:, sl] = jnp.dot(p, v[:, sl], preferred_element_type=jnp.float32)

    x = x + jnp.dot(attn_ref[...].astype(jnp.bfloat16), projw[0],
                    preferred_element_type=jnp.float32) + projb[0]

    # ---------------- MLP branch ----------------
    h = _ln(x, ln2g[0], ln2b[0], eps)
    h = jnp.dot(h.astype(jnp.bfloat16), fc1w[0],
                preferred_element_type=jnp.float32) + fc1b[0]
    h = _gelu_exact(h)
    x = x + jnp.dot(h.astype(jnp.bfloat16), fc2w[0],
                    preferred_element_type=jnp.float32) + fc2b[0]

    act_ref[...] = x                      # carry activations to the next depth step

    # ------- final backbone norm + head (CLS row only), after the last block -------
    @pl.when(l == pl.num_programs(1) - 1)
    def _():
        y = _ln(x[0:1, :], nrmg[...], nrmb[...], 1e-6)   # backbone .norm (LN is per-row)
        y = _ln(y, hlng[...], hlnb[...], 1e-5)           # head LayerNorm (default eps)
        logits_ref[0] = jnp.dot(y.astype(jnp.bfloat16), hw[...],
                                preferred_element_type=jnp.float32) + hb[...]


def pallas_vit_blocks_head(x, blocks, params, nheads, eps=1e-6):
    """x: (B, Nt, D) -> logits (B, out_dim); one fused pallas_call for all blocks + head."""
    B, Nt, D = x.shape
    depth = blocks["qkv_w"].shape[0]
    O = params["head_w"].shape[1]

    block_keys = ("ln1_g", "ln1_b", "qkv_w", "qkv_b", "proj_w", "proj_b",
                  "ln2_g", "ln2_b", "fc1_w", "fc1_b", "fc2_w", "fc2_b")
    block_ws = [blocks[k] for k in block_keys]                       # all (depth, r, c)
    head_ws = [params[k] for k in ("norm_g", "norm_b", "head_ln_g", "head_ln_b",
                                   "head_w", "head_b")]              # all 2-D

    in_specs = [pl.BlockSpec((1, Nt, D), lambda b, l: (b, 0, 0))]
    in_specs += [pl.BlockSpec((1,) + w.shape[1:], lambda b, l: (l, 0, 0)) for w in block_ws]
    in_specs += [pl.BlockSpec(w.shape, lambda b, l: (0, 0)) for w in head_ws]

    logits = pl.pallas_call(
        functools.partial(_blocks_head_kernel, nheads=nheads, eps=eps),
        out_shape=jax.ShapeDtypeStruct((B, 1, O), jnp.float32),
        grid=(B, depth),
        in_specs=in_specs,
        out_specs=pl.BlockSpec((1, 1, O), lambda b, l: (b, 0, 0)),
        scratch_shapes=[pltpu.VMEM((Nt, D), jnp.float32),   # resident activations
                        pltpu.VMEM((Nt, D), jnp.float32)],  # attention output buffer
        compiler_params=pltpu.CompilerParams(
            dimension_semantics=("parallel", "arbitrary"),
            # Plenty at toy size; at ViT-B scale raise toward ~64-100 MiB on the
            # 128 MiB parts (v5e/v6e) and K-tile fc1/fc2 to stay under v7x's 64 MiB.
            vmem_limit_bytes=32 * 1024 * 1024),
    )(x, *block_ws, *head_ws)
    return logits.reshape(B, O)


# -----------------------------------------------------------------------------
# Model (DINO-style VisionTransformer backbone + LayerNorm/Linear head)
# -----------------------------------------------------------------------------
CFG = dict(patch_size=8, embed_dim=32, depth=2, num_heads=4, mlp_ratio=4, out_dim=10)


def init_params(key, cfg):
    D = cfg["embed_dim"]
    depth = cfg["depth"]
    Dm = cfg["embed_dim"] * cfg["mlp_ratio"]
    O = cfg["out_dim"]
    p = cfg["patch_size"]
    Nt = cfg["n_tokens"]
    Kp = 3 * p * p
    bf = jnp.bfloat16

    def nrm(k, shape, std=0.02, dtype=jnp.float32):
        return (std * jax.random.normal(k, shape, dtype=jnp.float32)).astype(dtype)

    ks = iter(jax.random.split(key, 12))
    return {
        # matmul weights live in bf16 (half the DMA bytes, bf16 MXU inputs);
        # LN params / biases stay f32 (elementwise path).
        "patch_w": nrm(next(ks), (Kp, D), dtype=bf),     # flattened Conv2d weight, (C,ph,pw) order
        "patch_b": jnp.zeros((1, D), jnp.float32),
        "cls_token": nrm(next(ks), (1, 1, D)),
        "pos_embed": nrm(next(ks), (1, Nt, D)),
        "norm_g": jnp.ones((1, D), jnp.float32),
        "norm_b": jnp.zeros((1, D), jnp.float32),
        "head_ln_g": jnp.ones((1, D), jnp.float32),
        "head_ln_b": jnp.zeros((1, D), jnp.float32),
        "head_w": nrm(next(ks), (D, O), dtype=bf),
        "head_b": jnp.zeros((1, O), jnp.float32),
        "blocks": {   # stacked over depth so one pallas_call can index them per grid step
            "ln1_g": jnp.ones((depth, 1, D), jnp.float32),
            "ln1_b": jnp.zeros((depth, 1, D), jnp.float32),
            "qkv_w": nrm(next(ks), (depth, D, 3 * D), dtype=bf),
            "qkv_b": jnp.zeros((depth, 1, 3 * D), jnp.float32),
            "proj_w": nrm(next(ks), (depth, D, D), dtype=bf),
            "proj_b": jnp.zeros((depth, 1, D), jnp.float32),
            "ln2_g": jnp.ones((depth, 1, D), jnp.float32),
            "ln2_b": jnp.zeros((depth, 1, D), jnp.float32),
            "fc1_w": nrm(next(ks), (depth, D, Dm), dtype=bf),
            "fc1_b": jnp.zeros((depth, 1, Dm), jnp.float32),
            "fc2_w": nrm(next(ks), (depth, Dm, D), dtype=bf),
            "fc2_b": jnp.zeros((depth, 1, D), jnp.float32),
        },
    }


def vit_forward(params, x_nchw, cfg):
    B, C, H, W = x_nchw.shape
    p, nheads = cfg["patch_size"], cfg["num_heads"]
    nh, nw = H // p, W // p
    Np = nh * nw

    # --- patch embed: Conv2d(stride=patch) == im2col + matmul ---
    # TODO(synk): at real image sizes (224x224) do the im2col gather inside the
    # patch-embed kernel via BlockSpec index_map / in-kernel DMA from the NCHW image
    # instead of materializing the patch matrix in HBM.
    patches = (x_nchw.reshape(B, C, nh, p, nw, p)
               .transpose(0, 2, 4, 1, 3, 5)                 # (B, nh, nw, C, ph, pw)
               .reshape(B * Np, C * p * p))

    x = pallas_patch_embed(patches, params["patch_w"], params["patch_b"],
                           params["cls_token"], params["pos_embed"], B, Np)   # (B, Nt, D)

    # --- all blocks + final norm + head in one fused pallas_call ---
    return pallas_vit_blocks_head(x, params["blocks"], params, nheads, eps=1e-6)


# -----------------------------------------------------------------------------
# Pure-JAX reference (sanity check of the Pallas path; mirrors the bf16 matmul recipe)
# -----------------------------------------------------------------------------
def _ref_ln(x, g, b, eps):
    mu = jnp.mean(x, axis=-1, keepdims=True)
    var = jnp.mean((x - mu) ** 2, axis=-1, keepdims=True)
    return (x - mu) * jax.lax.rsqrt(var + eps) * g + b


def _ref_dot(a, w_bf16):
    return jnp.dot(a.astype(jnp.bfloat16), w_bf16, preferred_element_type=jnp.float32)


def ref_forward(params, x_nchw, cfg):
    B, C, H, W = x_nchw.shape
    p, D, nheads = cfg["patch_size"], cfg["embed_dim"], cfg["num_heads"]
    Dh = D // nheads
    nh, nw = H // p, W // p
    Np = nh * nw
    patches = (x_nchw.reshape(B, C, nh, p, nw, p).transpose(0, 2, 4, 1, 3, 5)
               .reshape(B, Np, C * p * p))
    tok = _ref_dot(patches, params["patch_w"]) + params["patch_b"]
    x = jnp.concatenate([jnp.broadcast_to(params["cls_token"], (B, 1, D)), tok], axis=1)
    x = x + params["pos_embed"]
    Nt = x.shape[1]
    blk = params["blocks"]
    depth = blk["qkv_w"].shape[0]
    for l in range(depth):
        h = _ref_ln(x, blk["ln1_g"][l], blk["ln1_b"][l], 1e-6)
        qkv = _ref_dot(h, blk["qkv_w"][l]) + blk["qkv_b"][l]
        qkv = qkv.reshape(B, Nt, 3, nheads, Dh).transpose(2, 0, 3, 1, 4)
        q, k, v = qkv[0] * (Dh ** -0.5), qkv[1], qkv[2]
        s = jnp.einsum("bhqd,bhkd->bhqk", q, k)
        a = jax.nn.softmax(s, axis=-1)
        o = jnp.einsum("bhqk,bhkd->bhqd", a, v).transpose(0, 2, 1, 3).reshape(B, Nt, D)
        x = x + _ref_dot(o, blk["proj_w"][l]) + blk["proj_b"][l]
        h = _ref_ln(x, blk["ln2_g"][l], blk["ln2_b"][l], 1e-6)
        h = jax.nn.gelu(_ref_dot(h, blk["fc1_w"][l]) + blk["fc1_b"][l], approximate=False)
        x = x + _ref_dot(h, blk["fc2_w"][l]) + blk["fc2_b"][l]
    cls = _ref_ln(x, params["norm_g"], params["norm_b"], 1e-6)[:, 0]
    y = _ref_ln(cls, params["head_ln_g"], params["head_ln_b"], 1e-5)
    return _ref_dot(y, params["head_w"]) + params["head_b"]


# -----------------------------------------------------------------------------
if __name__ == "__main__":
    cfg = dict(CFG)
    B, H, W = 2, 16, 16
    cfg["n_tokens"] = (H // cfg["patch_size"]) * (W // cfg["patch_size"]) + 1

    key = jax.random.PRNGKey(0)
    kp, kx = jax.random.split(key)
    params = init_params(kp, cfg)
    x = jax.random.normal(kx, (B, 3, H, W), dtype=jnp.float32)   # NCHW like PyTorch

    out = jax.block_until_ready(vit_forward(params, x, cfg))
    assert out.shape == (B, cfg["out_dim"]), out.shape

    ref = jax.block_until_ready(ref_forward(params, x, cfg))
    # erf polynomial / approx-reciprocal softmax / single-pass LN / bf16 rounding =>
    # small approximation error vs. the exact reference.
    assert jnp.allclose(out, ref, atol=1e-2, rtol=1e-2), float(jnp.max(jnp.abs(out - ref)))

    print("KERNEL_OK")
</pallas_src>

<mosaic_0001>
module attributes {stable_mosaic.version = 11 : i64} {
  func.func @_embed_kernel(%arg0: i32, %arg1: memref<8x192xf32, #tpu.memory_space<vmem>>, %arg2: memref<192x32xbf16, #tpu.memory_space<vmem>>, %arg3: memref<1x32xf32, #tpu.memory_space<vmem>>, %arg4: memref<1x1x32xf32, #tpu.memory_space<vmem>>, %arg5: memref<1x5x32xf32, #tpu.memory_space<vmem>>, %arg6: memref<2x5x32xf32, #tpu.memory_space<vmem>>) attributes {dimension_semantics = [#tpu.dimension_semantics<arbitrary>], iteration_bounds = array<i64: 1>, scalar_prefetch = 0 : i64, scratch_operands = 0 : i64, tpu.core_type = #tpu.core_type<tc>, window_params = [{pipeline_mode = #tpu.pipeline_mode<synchronous>, transform_indices = @transform_0, window_bounds = array<i64: 8, 192>}, {pipeline_mode = #tpu.pipeline_mode<synchronous>, transform_indices = @transform_1, window_bounds = array<i64: 192, 32>}, {pipeline_mode = #tpu.pipeline_mode<synchronous>, transform_indices = @transform_2, window_bounds = array<i64: 1, 32>}, {pipeline_mode = #tpu.pipeline_mode<synchronous>, transform_indices = @transform_3, window_bounds = array<i64: 1, 1, 32>}, {pipeline_mode = #tpu.pipeline_mode<synchronous>, transform_indices = @transform_4, window_bounds = array<i64: 1, 5, 32>}, {pipeline_mode = #tpu.pipeline_mode<synchronous>, transform_indices = @transform_5, window_bounds = array<i64: 2, 5, 32>}]} {
    %c0 = arith.constant 0 : index
    %c0_0 = arith.constant 0 : index
    %0 = vector.load %arg1[%c0, %c0_0] : memref<8x192xf32, #tpu.memory_space<vmem>>, vector<8x192xf32>
    %1 = arith.truncf %0 : vector<8x192xf32> to vector<8x192xbf16>
    %c0_1 = arith.constant 0 : index
    %c0_2 = arith.constant 0 : index
    %2 = vector.load %arg2[%c0_1, %c0_2] : memref<192x32xbf16, #tpu.memory_space<vmem>>, vector<192x32xbf16>
    %cst = arith.constant dense<0.000000e+00> : vector<8x32xf32>
    %3 = tpu.matmul %1, %2, %cst {dimension_numbers = #tpu.dot_dimension_numbers<[1], [0], [0], [1], [0, 0, 1, 1], [], []>} : vector<8x192xbf16>, vector<192x32xbf16>, vector<8x32xf32> -> vector<8x32xf32>
    %c0_3 = arith.constant 0 : index
    %c0_4 = arith.constant 0 : index
    %4 = vector.load %arg3[%c0_3, %c0_4] : memref<1x32xf32, #tpu.memory_space<vmem>>, vector<1x32xf32>
    %5 = vector.broadcast %4 : vector<1x32xf32> to vector<8x32xf32>
    %6 = arith.addf %3, %5 : vector<8x32xf32>
    %c0_5 = arith.constant 0 : index
    %c0_6 = arith.constant 0 : index
    %c0_7 = arith.constant 0 : index
    %7 = vector.load %arg4[%c0_5, %c0_6, %c0_7] : memref<1x1x32xf32, #tpu.memory_space<vmem>>, vector<1x1x32xf32>
    %8 = vector.shape_cast %7 : vector<1x1x32xf32> to vector<1x32xf32>
    %c0_8 = arith.constant 0 : index
    %c0_9 = arith.constant 0 : index
    %c0_10 = arith.constant 0 : index
    %9 = vector.load %arg5[%c0_8, %c0_9, %c0_10] : memref<1x5x32xf32, #tpu.memory_space<vmem>>, vector<1x1x32xf32>
    %10 = vector.shape_cast %9 : vector<1x1x32xf32> to vector<1x32xf32>
    %11 = arith.addf %8, %10 : vector<1x32xf32>
    %c0_11 = arith.constant 0 : index
    %c1 = arith.constant 1 : index
    %c0_12 = arith.constant 0 : index
    %12 = vector.load %arg5[%c0_11, %c1, %c0_12] : memref<1x5x32xf32, #tpu.memory_space<vmem>>, vector<1x4x32xf32>
    %13 = vector.shape_cast %12 : vector<1x4x32xf32> to vector<4x32xf32>
    %c0_13 = arith.constant 0 : index
    %c0_14 = arith.constant 0 : index
    %c0_15 = arith.constant 0 : index
    %14 = vector.load %arg6[%c0_13, %c0_14, %c0_15] : memref<2x5x32xf32, #tpu.memory_space<vmem>>, vector<1x1x32xf32>
    %15 = vector.shape_cast %14 : vector<1x1x32xf32> to vector<1x32xf32>
    %16 = vector.shape_cast %11 : vector<1x32xf32> to vector<1x1x32xf32>
    tpu.vector_store %arg6[%c0_13, %c0_14, %c0_15], %16 {strides = array<i32>} : memref<2x5x32xf32, #tpu.memory_space<vmem>>, vector<1x1x32xf32>,
    %17 = vector.extract_strided_slice %6 {offsets = [0, 0], sizes = [4, 32], strides = [1, 1]} : vector<8x32xf32> to vector<4x32xf32>
    %18 = arith.addf %17, %13 : vector<4x32xf32>
    %c0_16 = arith.constant 0 : index
    %c1_17 = arith.constant 1 : index
    %c0_18 = arith.constant 0 : index
    %19 = vector.load %arg6[%c0_16, %c1_17, %c0_18] : memref<2x5x32xf32, #tpu.memory_space<vmem>>, vector<1x4x32xf32>
    %20 = vector.shape_cast %19 : vector<1x4x32xf32> to vector<4x32xf32>
    %21 = vector.shape_cast %18 : vector<4x32xf32> to vector<1x4x32xf32>
    tpu.vector_store %arg6[%c0_16, %c1_17, %c0_18], %21 {strides = array<i32>} : memref<2x5x32xf32, #tpu.memory_space<vmem>>, vector<1x4x32xf32>,
    %c1_19 = arith.constant 1 : index
    %c0_20 = arith.constant 0 : index
    %c0_21 = arith.constant 0 : index
    %22 = vector.load %arg6[%c1_19, %c0_20, %c0_21] : memref<2x5x32xf32, #tpu.memory_space<vmem>>, vector<1x1x32xf32>
    %23 = vector.shape_cast %22 : vector<1x1x32xf32> to vector<1x32xf32>
    %24 = vector.shape_cast %11 : vector<1x32xf32> to vector<1x1x32xf32>
    tpu.vector_store %arg6[%c1_19, %c0_20, %c0_21], %24 {strides = array<i32>} : memref<2x5x32xf32, #tpu.memory_space<vmem>>, vector<1x1x32xf32>,
    %25 = vector.extract_strided_slice %6 {offsets = [4, 0], sizes = [4, 32], strides = [1, 1]} : vector<8x32xf32> to vector<4x32xf32>
    %26 = arith.addf %25, %13 : vector<4x32xf32>
    %c1_22 = arith.constant 1 : index
    %c1_23 = arith.constant 1 : index
    %c0_24 = arith.constant 0 : index
    %27 = vector.load %arg6[%c1_22, %c1_23, %c0_24] : memref<2x5x32xf32, #tpu.memory_space<vmem>>, vector<1x4x32xf32>
    %28 = vector.shape_cast %27 : vector<1x4x32xf32> to vector<4x32xf32>
    %29 = vector.shape_cast %26 : vector<4x32xf32> to vector<1x4x32xf32>
    tpu.vector_store %arg6[%c1_22, %c1_23, %c0_24], %29 {strides = array<i32>} : memref<2x5x32xf32, #tpu.memory_space<vmem>>, vector<1x4x32xf32>,
    return
  }
  func.func @transform_0(%arg0: i32) -> (i32, i32) {
    %c0_i32 = arith.constant 0 : i32
    %c0_i32_0 = arith.constant 0 : i32
    %c0_i32_1 = arith.constant 0 : i32
    return %c0_i32, %c0_i32_0 : i32, i32
  }
  func.func @transform_1(%arg0: i32) -> (i32, i32) {
    %c0_i32 = arith.constant 0 : i32
    %c0_i32_0 = arith.constant 0 : i32
    %c0_i32_1 = arith.constant 0 : i32
    return %c0_i32, %c0_i32_0 : i32, i32
  }
  func.func @transform_2(%arg0: i32) -> (i32, i32) {
    %c0_i32 = arith.constant 0 : i32
    %c0_i32_0 = arith.constant 0 : i32
    %c0_i32_1 = arith.constant 0 : i32
    return %c0_i32, %c0_i32_0 : i32, i32
  }
  func.func @transform_3(%arg0: i32) -> (i32, i32, i32) {
    %c0_i32 = arith.constant 0 : i32
    %c0_i32_0 = arith.constant 0 : i32
    %c0_i32_1 = arith.constant 0 : i32
    %c0_i32_2 = arith.constant 0 : i32
    return %c0_i32, %c0_i32_0, %c0_i32_1 : i32, i32, i32
  }
  func.func @transform_4(%arg0: i32) -> (i32, i32, i32) {
    %c0_i32 = arith.constant 0 : i32
    %c0_i32_0 = arith.constant 0 : i32
    %c0_i32_1 = arith.constant 0 : i32
    %c0_i32_2 = arith.constant 0 : i32
    return %c0_i32, %c0_i32_0, %c0_i32_1 : i32, i32, i32
  }
  func.func @transform_5(%arg0: i32) -> (i32, i32, i32) {
    %c0_i32 = arith.constant 0 : i32
    %c0_i32_0 = arith.constant 0 : i32
    %c0_i32_1 = arith.constant 0 : i32
    %c0_i32_2 = arith.constant 0 : i32
    return %c0_i32, %c0_i32_0, %c0_i32_1 : i32, i32, i32
  }
}

</mosaic_0001>

<bundles_post_ra>
// kernel: tpu_custom_call.1
= control target key start
LH: loop header
LB: loop body
LE: loop exit
PB: predicated region body
PF: predicated region fallthrough
CT: control target
= control target key end

     0   :  { %v222_v0 = vmov 0   ;;  %vm128_vm0 = vcmask 523264   ;;  %vm176_vm1 = vcmask 253952   ;;  %vm179_vm2 = vcmask 257024   ;;  %s319_s1 = inlined_call_operand.vmem [shape: bf16[192,32], index: 1, kind: input, shape index: {}]   ;;  %s320_s0 = inlined_call_operand.vmem [shape: f32[8,192], index: 0, kind: input, shape index: {}]   ;;  %s321_s3 = inlined_call_operand.vmem [shape: f32[1,1,32], index: 3, kind: input, shape index: {}]   ;;  %s322_s4 = inlined_call_operand.vmem [shape: f32[1,5,32], index: 4, kind: input, shape index: {}]   ;;  %s323_s5 = inlined_call_operand.vmem [shape: f32[2,5,32], index: 5, kind: output, shape index: {}]   ;;  %s324_s2 = inlined_call_operand.vmem [shape: f32[1,32], index: 2, kind: input, shape index: {}]  }
   0x1   :  { %132 = vmatprep.subr.bf16.mxu0 %v222_v0  ;;  %v210_v1 = vld [vmem:[%s319_s1 + $0x38] sm:$0xff]   ;;  %v211_v2 = vld [vmem:[%s319_s1 + $0x30] sm:$0xff]   ;;  %v212_v3 = vld [vmem:[%s319_s1 + $0x28] sm:$0xff]   ;;  %vm187_vm3 = vcmask 261124  }
   0x2   :  { %133 = vmatpush1.bf16.msra.mxu0 %v210_v1  ;;  %v213_v4 = vld [vmem:[%s319_s1 + $0x20] sm:$0xff]   ;;  %v22_v5 = vld [vmem:[%s320_s0 + $0x8] sm:$0xff]  ;;  %v214_v7 = vld [vmem:[%s319_s1 + $0x18] sm:$0xff]  }
   0x3   :  { %134 = vmatprep.subr.bf16.mxu0 %v222_v0  ;;  %v24_v6 = vpack.c.bf16 %v22_v5, %v22_v5  ;;  %v215_v8 = vld [vmem:[%s319_s1 + $0x10] sm:$0xff]   ;;  %v216_v9 = vld [vmem:[%s319_s1 + $0x8] sm:$0xff]   ;;  %v217_v10 = vld [vmem:[%s319_s1] sm:$0xff]  }
   0x4   :  { %v218_v11 = vld [vmem:[%s319_s1 + $0x58] sm:$0xff]   ;;  %v219_v12 = vld [vmem:[%s319_s1 + $0x50] sm:$0xff]   ;;  %v220_v13 = vld [vmem:[%s319_s1 + $0x48] sm:$0xff]  }
   0x5   :  { %206 = vmatprep.mubr.msk.bf16.mxu0 %vm128_vm0, %v24_v6  ;;  %v221_v14 = vld [vmem:[%s319_s1 + $0x40] sm:$0xff]  }
   0x6   :  { %135 = vmatpush1.bf16.msra.mxu0 %v211_v2  ;;  %v21_v15 = vld [vmem:[%s320_s0] sm:$0xff] }
   0x7   :  { %136 = vmatprep.subr.bf16.mxu0 %v222_v0  ;;  %v23_v16 = vpack.c.bf16 %v21_v15, %v21_v15  ;;  %v172_v17 = vld [vmem:[%s321_s3] sm:$0x1]  ;;  %v175_v20 = vld [vmem:[%s322_s4 + $0x1] sm:$0xf] }
   0x8   :  { %v173_v18 = vld [vmem:[%s322_s4] sm:$0x1]  ;;  %v184_v22 = vrot.slane %v175_v20, 4 }
   0x9   :  { %v174_v19 = vadd.f32 %v173_v18, %v172_v17  ;;  %v193_v21 = vld [vmem:[%s324_s2] ss:$0 sm:$0xff] }
   0xa   :  { %137 = vmatpush1.bf16.msra.mxu0 %v212_v3 }
   0xb   :  { %138 = vmatprep.subr.bf16.mxu0 %v222_v0  ;;  %177 = vst.msk [vmem:[%s323_s5] sm:$0x1] %vm176_vm1, %v174_v19  ;;  %207 = vst.msk [vmem:[%s323_s5 + $0x8] sm:$0x1] %vm176_vm1, %v174_v19 }
   0xe   :  { %139 = vmatpush1.bf16.msra.mxu0 %v213_v4 }
   0xf   :  { %140 = vmatprep.subr.bf16.mxu0 %v222_v0 }
  0x12   :  { %141 = vmatpush1.bf16.msra.mxu0 %v214_v7 }
  0x13   :  { %142 = vmatprep.subr.bf16.mxu0 %v222_v0 }
  0x16   :  { %143 = vmatpush1.bf16.msra.mxu0 %v215_v8 }
  0x17   :  { %144 = vmatprep.subr.bf16.mxu0 %v222_v0 }
  0x1a   :  { %145 = vmatpush1.bf16.msra.mxu0 %v216_v9 }
  0x1b   :  { %146 = vmatprep.subr.bf16.mxu0 %v222_v0 }
  0x1e   :  { %147 = vmatpush1.bf16.msra.mxu0 %v217_v10 }
  0x1f   :  { %156 = vmatprep.subr.bf16.mxu0 %v222_v0 }
  0x22   :  { %157 = vmatpush2.bf16.msra.mxu0 %v218_v11 }
  0x23   :  { %158 = vmatprep.subr.bf16.mxu0 %v222_v0 }
  0x26   :  { %159 = vmatpush2.bf16.msra.mxu0 %v219_v12 }
  0x27   :  { %160 = vmatprep.subr.bf16.mxu0 %v222_v0 }
  0x2a   :  { %161 = vmatpush2.bf16.msra.mxu0 %v220_v13 }
  0x2b   :  { %162 = vmatprep.subr.bf16.mxu0 %v222_v0 }
  0x2e   :  { %163 = vmatpush2.bf16.msra.mxu0 %v221_v14 }
  0x31   :  { %165 = vmatmul.mubr.bf16.vlgmr.msra.gmra.mxu0 %v23_v16 }
  0xf1   :  { %v166_v23 = vpop.f32.mrf.mxu0 }
  0xf2   :  { %v167_v24 = vadd.f32 %v193_v21, %v166_v23 }
  0xf3   :  { %v168_v25 = vpop.f32.mrf.mxu0 }
  0xf4   :  { %v178_v26 = vadd.f32 %v175_v20, %v167_v24  ;;  %v186_v27 = vadd.f32 %v184_v22, %v167_v24 }
  0xf5   :  { %v169_v28 = vpop.f32.mrf.mxu0 }
  0xf6   :  { %180 = vst.msk [vmem:[%s323_s5 + $0x1] sm:$0xf] %vm179_vm2, %v178_v26 }
  0xf7   :  { %208 = vst.msk [vmem:[%s323_s5 + $0x5] sm:$0xf0] %vm187_vm3, %v186_v27  ;;  %v170_v29 = vpop.f32.mrf.mxu0 }

</bundles_post_ra>
